<compile_context>
chip_gen: v7x
topology: tpu7x:2x2x1
jax: 0.10.0
libtpu: 0.0.40
codegen_flags: <defaults>
</compile_context>

<pallas_src>
import functools

import jax
import jax.numpy as jnp
from jax import lax
from jax.experimental import pallas as pl
from jax.experimental.pallas import tpu as pltpu

_LANE = 128


def _pow_gamma(x, gamma):
    """x ** gamma without exp/log lowering when gamma is an integer."""
    g = float(gamma)
    if g == 2.0:
        return jnp.square(x)
    if g.is_integer():
        return lax.integer_pow(x, int(g))
    # Non-integer gamma: clamp the base so pow (exp(gamma*log(x))) never sees x <= 0.
    return jnp.power(jnp.maximum(x, jnp.float32(1e-12)), jnp.float32(g))


def _focal_loss_kernel(p_ref, t_ref, o_ref, *, gamma, inv_n):
    p = p_ref[...].astype(jnp.float32)
    t = t_ref[...].astype(jnp.float32)

    eps = jnp.float32(1e-12)
    log_p = jnp.log(jnp.maximum(p, eps))          # logsigmoid(input)  == log(p)
    log_1mp = jnp.log(jnp.maximum(1.0 - p, eps))  # logsigmoid(-input) == log(1-p)

    loss = (-(t * _pow_gamma(1.0 - p, gamma) * log_p)
            - (1.0 - t) * _pow_gamma(p, gamma) * log_1mp)

    # reduction='mean' in the reference is a mean over dim 0 (batch) only.
    o_ref[...] = (jnp.sum(loss, axis=0, keepdims=True)
                  * jnp.float32(inv_n)).astype(o_ref.dtype)


def _pick_sublane_block(r, n, in_bytes, budget_bytes):
    """Largest multiple-of-8 divisor of r whose double-buffered footprint fits."""
    candidates = [s for s in range(8, r + 1, 8) if r % s == 0]
    if not candidates:
        # No multiple-of-8 divisor: the only legal block is the full extent.
        return r
    best = candidates[0]
    for s in candidates:
        # 2 inputs x 2 pipeline buffers x (n, s, 128) + 2 output buffers (1, s, 128) f32
        foot = 2 * 2 * n * s * _LANE * in_bytes + 2 * s * _LANE * 4
        if foot <= budget_bytes:
            best = s
    return best


def focal_loss(p, target, gamma=2.0, vmem_budget_bytes=8 << 20):
    """p, target: (N, C, H, W) arrays (f32 or bf16). Returns (C, H, W) loss (mean over N)."""
    assert p.shape == target.shape
    n, c, h, w = p.shape
    f = c * h * w
    f_pad = -(-f // _LANE) * _LANE

    p2 = p.reshape(n, f)
    t2 = target.reshape(n, f)
    if f_pad != f:
        pad = f_pad - f
        p2 = jnp.pad(p2, ((0, 0), (0, pad)))   # p=0, t=0 -> exactly 0 loss
        t2 = jnp.pad(t2, ((0, 0), (0, pad)))

    r = f_pad // _LANE
    p3 = p2.reshape(n, r, _LANE)
    t3 = t2.reshape(n, r, _LANE)

    in_bytes = max(p3.dtype.itemsize, t3.dtype.itemsize)
    s = _pick_sublane_block(r, n, in_bytes, vmem_budget_bytes)

    kernel = functools.partial(_focal_loss_kernel, gamma=gamma, inv_n=1.0 / n)

    n_elem = n * f_pad
    cost = pl.CostEstimate(
        flops=12 * n_elem,
        transcendentals=2 * n_elem,
        bytes_accessed=(p3.size * p3.dtype.itemsize
                        + t3.size * t3.dtype.itemsize
                        + r * _LANE * 4),
    )

    out = pl.pallas_call(
        kernel,
        out_shape=jax.ShapeDtypeStruct((1, r, _LANE), jnp.float32),
        grid_spec=pltpu.PrefetchScalarGridSpec(
            num_scalar_prefetch=0,
            grid=(r // s,),
            in_specs=[
                pl.BlockSpec((n, s, _LANE), lambda j: (0, j, 0)),
                pl.BlockSpec((n, s, _LANE), lambda j: (0, j, 0)),
            ],
            out_specs=pl.BlockSpec((1, s, _LANE), lambda j: (0, j, 0)),
        ),
        compiler_params=pltpu.CompilerParams(
            dimension_semantics=("parallel",),
            vmem_limit_bytes=32 << 20,  # <= physical VMEM on v5e/v6e/v7x
        ),
        cost_estimate=cost,
    )(p3, t3)

    return out.reshape(f_pad)[:f].reshape(c, h, w)


def _reference(p, target, gamma=2.0):
    log_p = jnp.log(jnp.maximum(p, 1e-12))
    log_1mp = jnp.log(jnp.maximum(1.0 - p, 1e-12))
    loss = (-(target * (1.0 - p) ** gamma * log_p)
            - (1.0 - target) * p ** gamma * log_1mp)
    return loss.mean(axis=0)


if __name__ == "__main__":
    key = jax.random.PRNGKey(0)
    kp, kt = jax.random.split(key)

    N, C, H, W = 2, 4, 16, 16
    # p plays the role of sigmoid(logits): values strictly in (0, 1).
    p = jax.random.uniform(kp, (N, C, H, W), dtype=jnp.float32, minval=0.01, maxval=0.99)
    target = (jax.random.uniform(kt, (N, C, H, W)) > 0.5).astype(jnp.float32)

    out = focal_loss(p, target, gamma=2.0)
    out = jax.block_until_ready(out)

    ref = _reference(p, target, gamma=2.0)
    assert out.shape == (C, H, W)
    assert jnp.allclose(out, ref, atol=1e-5, rtol=1e-4)

    print("KERNEL_OK")
</pallas_src>

<mosaic_0001>
module attributes {stable_mosaic.version = 11 : i64} {
  func.func @_focal_loss_kernel(%arg0: i32, %arg1: memref<2x8x128xf32, #tpu.memory_space<vmem>>, %arg2: memref<2x8x128xf32, #tpu.memory_space<vmem>>, %arg3: memref<1x8x128xf32, #tpu.memory_space<vmem>>) attributes {dimension_semantics = [#tpu.dimension_semantics<parallel>], iteration_bounds = array<i64: 1>, scalar_prefetch = 0 : i64, scratch_operands = 0 : i64, tpu.core_type = #tpu.core_type<tc>, window_params = [{transform_indices = @transform_0, window_bounds = array<i64: 2, 8, 128>}, {transform_indices = @transform_1, window_bounds = array<i64: 2, 8, 128>}, {transform_indices = @transform_2, window_bounds = array<i64: 1, 8, 128>}]} {
    %c0 = arith.constant 0 : index
    %c0_0 = arith.constant 0 : index
    %c0_1 = arith.constant 0 : index
    %0 = vector.load %arg1[%c0, %c0_0, %c0_1] : memref<2x8x128xf32, #tpu.memory_space<vmem>>, vector<2x8x128xf32>
    %c0_2 = arith.constant 0 : index
    %c0_3 = arith.constant 0 : index
    %c0_4 = arith.constant 0 : index
    %1 = vector.load %arg2[%c0_2, %c0_3, %c0_4] : memref<2x8x128xf32, #tpu.memory_space<vmem>>, vector<2x8x128xf32>
    %cst = arith.constant 9.99999996E-13 : f32
    %2 = vector.broadcast %cst : f32 to vector<2x8x128xf32>
    %3 = arith.maximumf %0, %2 : vector<2x8x128xf32>
    %4 = math.log %3 : vector<2x8x128xf32>
    %cst_5 = arith.constant 1.000000e+00 : f32
    %5 = vector.broadcast %cst_5 : f32 to vector<2x8x128xf32>
    %6 = arith.subf %5, %0 : vector<2x8x128xf32>
    %cst_6 = arith.constant 9.99999996E-13 : f32
    %7 = vector.broadcast %cst_6 : f32 to vector<2x8x128xf32>
    %8 = arith.maximumf %6, %7 : vector<2x8x128xf32>
    %9 = math.log %8 : vector<2x8x128xf32>
    %cst_7 = arith.constant 1.000000e+00 : f32
    %10 = vector.broadcast %cst_7 : f32 to vector<2x8x128xf32>
    %11 = arith.subf %10, %0 : vector<2x8x128xf32>
    %12 = arith.mulf %11, %11 : vector<2x8x128xf32>
    %13 = arith.mulf %1, %12 : vector<2x8x128xf32>
    %14 = arith.mulf %13, %4 : vector<2x8x128xf32>
    %cst_8 = arith.constant 0.000000e+00 : f32
    %15 = vector.broadcast %cst_8 : f32 to vector<2x8x128xf32>
    %16 = arith.subf %15, %14 : vector<2x8x128xf32>
    %cst_9 = arith.constant 1.000000e+00 : f32
    %17 = vector.broadcast %cst_9 : f32 to vector<2x8x128xf32>
    %18 = arith.subf %17, %1 : vector<2x8x128xf32>
    %19 = arith.mulf %0, %0 : vector<2x8x128xf32>
    %20 = arith.mulf %18, %19 : vector<2x8x128xf32>
    %21 = arith.mulf %20, %9 : vector<2x8x128xf32>
    %22 = arith.subf %16, %21 : vector<2x8x128xf32>
    %cst_10 = arith.constant dense<0.000000e+00> : vector<8x128xf32>
    %23 = vector.multi_reduction <add>, %22, %cst_10 [0] : vector<2x8x128xf32> to vector<8x128xf32>
    %24 = vector.shape_cast %23 : vector<8x128xf32> to vector<1x8x128xf32>
    %cst_11 = arith.constant 5.000000e-01 : f32
    %25 = vector.broadcast %cst_11 : f32 to vector<1x8x128xf32>
    %26 = arith.mulf %24, %25 : vector<1x8x128xf32>
    %c0_12 = arith.constant 0 : index
    %c0_13 = arith.constant 0 : index
    %c0_14 = arith.constant 0 : index
    %27 = vector.load %arg3[%c0_12, %c0_13, %c0_14] : memref<1x8x128xf32, #tpu.memory_space<vmem>>, vector<1x8x128xf32>
    tpu.vector_store %arg3[%c0_12, %c0_13, %c0_14], %26 {strides = array<i32>} : memref<1x8x128xf32, #tpu.memory_space<vmem>>, vector<1x8x128xf32>,
    return
  }
  func.func @transform_0(%arg0: i32) -> (i32, i32, i32) {
    %c0_i32 = arith.constant 0 : i32
    %c0_i32_0 = arith.constant 0 : i32
    %c0_i32_1 = arith.constant 0 : i32
    return %c0_i32, %arg0, %c0_i32_0 : i32, i32, i32
  }
  func.func @transform_1(%arg0: i32) -> (i32, i32, i32) {
    %c0_i32 = arith.constant 0 : i32
    %c0_i32_0 = arith.constant 0 : i32
    %c0_i32_1 = arith.constant 0 : i32
    return %c0_i32, %arg0, %c0_i32_0 : i32, i32, i32
  }
  func.func @transform_2(%arg0: i32) -> (i32, i32, i32) {
    %c0_i32 = arith.constant 0 : i32
    %c0_i32_0 = arith.constant 0 : i32
    %c0_i32_1 = arith.constant 0 : i32
    return %c0_i32, %arg0, %c0_i32_0 : i32, i32, i32
  }
}

</mosaic_0001>

<bundles_post_ra>
// kernel: tpu_custom_call.1
= control target key start
LH: loop header
LB: loop body
LE: loop exit
PB: predicated region body
PF: predicated region fallthrough
CT: control target
= control target key end

     0   :  { %7 = vsyncpa [#allocation3], 0  ;;  %s236_s0 = inlined_call_operand.hbm [shape: f32[2,8,128], index: 0, kind: input, shape index: {}]   ;;  %s237_s1 = inlined_call_operand.hbm [shape: f32[2,8,128], index: 1, kind: input, shape index: {}]   ;;  %s238_s2 = inlined_call_operand.hbm [shape: f32[1,8,128], index: 2, kind: output, shape index: {}]  }
   0x1   :  { %8 = vsyncpa [#allocation6], 0 }
   0x2   :  { %9 = vsyncpa [#allocation4], 0  ;;  %s180_s9 = smov [#allocation2]   ;;  %s108_s13 = scalar_lea.hbm %s236_s0, 256 }
   0x3   :  { %s15_s10 = sshll.u32 %s180_s9, 4  ;;  %p109_p0 = scmp.ne.s32.totalorder %s236_s0, %s108_s13  ;;  %s16_s10 = int_to_ptr.vmem [resolvable:$true] %s15_s10 }
   0x4   :  { %p112_p1 = scmp.lt.u32.totalorder %s108_s13, %s236_s0 }
   0x6   :  { %p114_p2 = pnand %p112_p1, %p109_p0 }
   0x8   :  { %117 = shalt.err (!%p114_p2)
}
   0x9   :  { %s118_s18 = scalar_lea.vmem %s16_s10, 256  ;;  %p123_p4 = scmp.lt.s32.totalorder %s16_s10, %s16_s10 }
   0xa   :  { %p119_p3 = scmp.ne.s32.totalorder %s16_s10, %s118_s18  ;;  %p124_p5 = scmp.lt.s32.totalorder %s118_s18, %s118_s18 }
   0xc   :  { %p125_p6 = por %p124_p5, %p123_p4 }
   0xe   :  { %p126_p7 = pnand %p125_p6, %p119_p3 }
  0x10   :  { %129 = shalt.err (!%p126_p7)
}
  0x11   :  { %s181_s19 = smov 128   ;;  %s182_s20 = smov 8  }
  0x12   :  { %21 = dma.hbm_to_vmem [thread:$0]  %s236_s0, 256, %s16_s10, [#allocation3], %s181_s19, %s181_s19, %s182_s20  }
  0x13   :  { %s183_s23 = smov [#allocation5]   ;;  %s130_s27 = scalar_lea.hbm %s237_s1, 256 }
  0x14   :  { %s27_s24 = sshll.u32 %s183_s23, 4  ;;  %p131_p8 = scmp.ne.s32.totalorder %s237_s1, %s130_s27  ;;  %s28_s24 = int_to_ptr.vmem [resolvable:$true] %s27_s24 }
  0x15   :  { %p134_p9 = scmp.lt.u32.totalorder %s130_s27, %s237_s1 }
  0x17   :  { %p136_p10 = pnand %p134_p9, %p131_p8 }
  0x19   :  { %139 = shalt.err (!%p136_p10)
}
  0x1a   :  { %s140_s4 = scalar_lea.vmem %s28_s24, 256  ;;  %p145_p12 = scmp.lt.s32.totalorder %s28_s24, %s28_s24 }
  0x1b   :  { %p141_p11 = scmp.ne.s32.totalorder %s28_s24, %s140_s4  ;;  %p146_p13 = scmp.lt.s32.totalorder %s140_s4, %s140_s4 }
  0x1d   :  { %p147_p0 = por %p146_p13, %p145_p12 }
  0x1f   :  { %p148_p1 = pnand %p147_p0, %p141_p11 }
  0x21   :  { %151 = shalt.err (!%p148_p1)
}
  0x22   :  { %33 = dma.hbm_to_vmem [thread:$0]  %s237_s1, 256, %s28_s24, [#allocation6], %s181_s19, %s181_s19, %s182_s20  }
  0x23   :  { %174 = dma.done.wait [#allocation3], 256  }
  0x24   :  { %175 = vsyncadd [#allocation3], 4294967040 }
  0x25   :  { %176 = dma.done.wait [#allocation6], 256  }
  0x26   :  { %177 = vsyncadd [#allocation6], 4294967040  ;;  %v40_v0 = vld [vmem:[#allocation2] sm:$0xff]  ;;  %v41_v1 = vld [vmem:[#allocation2 + $0x8] sm:$0xff]  ;;  %s184_s1 = smov [#allocation7]  }
  0x27   :  { %v44_v2 = vmax.f32 %v40_v0, 1e-12  ;;  %v45_v3 = vmax.f32 %v41_v1, 1e-12  ;;  %v50_v4 = vsub.f32 1.0, %v40_v0  ;;  %v51_v5 = vsub.f32 1.0, %v41_v1 }
  0x28   :  { %v42_v8 = vld [vmem:[#allocation5] sm:$0xff]  ;;  %v43_v9 = vld [vmem:[#allocation5 + $0x8] sm:$0xff]  ;;  %v68_v13 = vmul.f32 %v40_v0, %v40_v0  ;;  %v69_v15 = vmul.f32 %v41_v1, %v41_v1  ;;  %s85_s6 = sshll.u32 %s184_s1, 4  ;;  %s86_s6 = int_to_ptr.vmem [resolvable:$true] %s85_s6 }
  0x29   :  { %100 = vlog2.f32 %v44_v2  ;;  %v52_v6 = vmax.f32 %v50_v4, 1e-12  ;;  %v53_v7 = vmax.f32 %v51_v5, 1e-12  ;;  %v58_v10 = vmul.f32 %v50_v4, %v50_v4  ;;  %s152_s7 = scalar_lea.vmem %s86_s6, 128  ;;  %p157_p3 = scmp.lt.s32.totalorder %s86_s6, %s86_s6 }
  0x2a   :  { %102 = vlog2.f32 %v45_v3  ;;  %v59_v11 = vmul.f32 %v51_v5, %v51_v5  ;;  %v66_v12 = vsub.f32 1.0, %v42_v8  ;;  %v67_v14 = vsub.f32 1.0, %v43_v9  ;;  %p153_p2 = scmp.ne.s32.totalorder %s86_s6, %s152_s7  ;;  %p158_p4 = scmp.lt.s32.totalorder %s152_s7, %s152_s7 }
  0x2b   :  { %104 = vlog2.f32 %v52_v6  ;;  %v60_v16 = vmul.f32 %v58_v10, %v42_v8 }
  0x2c   :  { %106 = vlog2.f32 %v53_v7  ;;  %v61_v18 = vmul.f32 %v59_v11, %v43_v9  ;;  %v70_v21 = vmul.f32 %v68_v13, %v66_v12  ;;  %v71_v24 = vmul.f32 %v69_v15, %v67_v14  ;;  %p159_p5 = por %p158_p4, %p157_p3 }
  0x2e   :  { %p160_p6 = pnand %p159_p5, %p153_p2 }
  0x33   :  { %v101_v17 = vpop.eup %100 }
  0x34   :  { %v103_v19 = vpop.eup %102  ;;  %v47_v20 = vmul.f32 0.6931472, %v101_v17 }
  0x35   :  { %v105_v22 = vpop.eup %104  ;;  %v49_v23 = vmul.f32 0.6931472, %v103_v19 }
  0x36   :  { %v107_v25 = vpop.eup %106  ;;  %v55_v26 = vmul.f32 0.6931472, %v105_v22  ;;  %v62_v27 = vmul.f32 %v60_v16, %v47_v20 }
  0x37   :  { %v57_v28 = vmul.f32 0.6931472, %v107_v25  ;;  %v63_v29 = vmul.f32 %v61_v18, %v49_v23 }
  0x38   :  { %v64_v30 = vsub.f32 0.0, %v62_v27  ;;  %v72_v31 = vmul.f32 %v70_v21, %v55_v26 }
  0x39   :  { %v65_v32 = vsub.f32 0.0, %v63_v29  ;;  %v73_v33 = vmul.f32 %v71_v24, %v57_v28 }
  0x3a   :  { %v74_v34 = vsub.f32 %v64_v30, %v72_v31 }
  0x3b   :  { %v75_v35 = vsub.f32 %v65_v32, %v73_v33 }
  0x3d   :  { %v76_v36 = vadd.f32 %v75_v35, %v74_v34 }
  0x3f   :  { %v77_v37 = vmul.f32 0.5, %v76_v36 }
  0x41   :  { %78 = vst [vmem:[#allocation7] sm:$0xff] %v77_v37 }
  0x42   :  { %163 = shalt.err (!%p160_p6)
}
  0x43   :  { %s164_s10 = scalar_lea.hbm %s238_s2, 128 }
  0x44   :  { %p165_p7 = scmp.ne.s32.totalorder %s238_s2, %s164_s10  ;;  %p168_p8 = scmp.lt.u32.totalorder %s164_s10, %s238_s2 }
  0x46   :  { %p170_p9 = pnand %p168_p8, %p165_p7 }
  0x48   :  { %173 = shalt.err (!%p170_p9)
}
  0x49   :  { %88 = dma.vmem_to_hbm [thread:$0]  %s86_s6, 128, %s238_s2, [#allocation4]  }
  0x4a   :  { %178 = dma.done.wait [#allocation4], 128  }
  0x4b   :  { %179 = vsyncadd [#allocation4], 4294967168 }
  0x4c   :  { %92 = vsyncpa [#allocation3], 1 }
  0x4d   :  { %93 = vsyncpa [#allocation6], 1 }
  0x4e   :  { %94 = vsyncpa [#allocation4], 1 }

</bundles_post_ra>
